<compile_context>
chip_gen: v7x
topology: tpu7x:2x2x1
jax: 0.10.0
libtpu: 0.0.40
codegen_flags: <defaults>
</compile_context>

<pallas_src>
import jax
import jax.numpy as jnp
from jax import lax
from jax.experimental import pallas as pl
from jax.experimental.pallas import tpu as pltpu


def _round_up(v, m):
    return (v + m - 1) // m * m


def _snn_lif_kernel(beta_ref, bias_ref, x_ref, w_ref, o0_ref, o1_ref,
                    cur0_ref, cur1_ref, mem0_ref, mem1_ref, rst0_ref, rst1_ref):
    """One (batch tile, time tile) grid step.

    beta_ref : SMEM (1,)          leak factor (already clamped to [0, 1])
    bias_ref : SMEM (2,)          fc1 bias
    x_ref    : VMEM (bt, F, Tt)   native-layout input block (time on lanes)
    w_ref    : VMEM (2, F, 1)     fc1 weight, one (F, 1) column per neuron
    o0/o1    : VMEM (Tt, bt)      spike outputs (batch on the 128-lane axis)
    cur0/1   : VMEM (Tt, bt)      scratch: per-tile synaptic currents
    mem*/rst*: VMEM (1, bt)       scratch: LIF state carried across time tiles
    """
    Tt, bt = o0_ref.shape
    beta = beta_ref[0]
    thr = jnp.float32(1.0)

    # ---- Projection for this tile (hoisted off the serial critical path). ----
    # out_features == 2 and F is tiny, so this is a VPU broadcast-multiply plus
    # a reduce over the F (sublane) axis; only the two small (bt, Tt) current
    # planes are transposed (XLU) into the lane-dense recurrence layout.
    x = x_ref[...]                                        # (bt, F, Tt)
    c0 = jnp.sum(x * w_ref[0], axis=1)                    # (bt, Tt)
    c1 = jnp.sum(x * w_ref[1], axis=1)                    # (bt, Tt)
    cur0_ref[...] = jnp.transpose(c0) + bias_ref[0]       # (Tt, bt)
    cur1_ref[...] = jnp.transpose(c1) + bias_ref[1]

    # ---- Reset the LIF state at the first time tile of every batch tile. ----
    @pl.when(pl.program_id(1) == 0)
    def _():
        z = jnp.zeros((1, bt), jnp.float32)
        mem0_ref[...] = z                                  # init_leaky() -> zeros
        mem1_ref[...] = z
        rst0_ref[...] = z                                  # spk_{-1} == 0
        rst1_ref[...] = z

    # ---- Serial LIF recurrence over this time tile (elementwise only). ------
    # reset_t == heaviside(mem_{t-1} - 1) == spk_{t-1}, so the previous spike is
    # carried and reused as the reset (threshold == 1.0 is folded).
    def step(t, carry):
        m0, m1, r0, r1 = carry                             # each (1, bt)
        m0 = beta * m0 + cur0_ref[pl.ds(t, 1), :] - r0
        m1 = beta * m1 + cur1_ref[pl.ds(t, 1), :] - r1
        s0 = (m0 > thr).astype(jnp.float32)
        s1 = (m1 > thr).astype(jnp.float32)
        o0_ref[pl.ds(t, 1), :] = s0                        # lane-dense row store
        o1_ref[pl.ds(t, 1), :] = s1
        return m0, m1, s0, s1

    carry = (mem0_ref[...], mem1_ref[...], rst0_ref[...], rst1_ref[...])
    m0, m1, r0, r1 = lax.fori_loop(0, Tt, step, carry, unroll=8)

    # ---- Persist state for the next time tile of this batch tile. -----------
    mem0_ref[...] = m0
    mem1_ref[...] = m1
    rst0_ref[...] = r0
    rst1_ref[...] = r1


def snn_forward(x_bft, weight, bias, beta, *, batch_tile=128, time_tile=128):
    """x_bft: [batch, input_features, time_steps] (native PyTorch layout).
    Returns spikes of shape [time_steps, batch, 2] (== torch.stack(spks, 0))."""
    B, F, T = x_bft.shape
    x = jnp.asarray(x_bft, jnp.float32)

    # ---- Tile selection & padding (blocks must tile the padded arrays). -----
    # Block minor dims must be multiples of 128 (or equal the full dim), so the
    # time tile is a multiple of 128 whenever we actually tile the time axis.
    batch_tile = max(128, _round_up(batch_tile, 128))
    time_tile = max(128, _round_up(time_tile, 128))
    if B >= batch_tile:
        bt, B_pad = batch_tile, _round_up(B, batch_tile)
    else:
        bt = B_pad = _round_up(B, 8)          # single batch tile == full dim
    if T >= time_tile:
        Tt, T_pad = time_tile, _round_up(T, time_tile)
    else:
        Tt = T_pad = _round_up(T, 8)          # single time tile == full dim
    if (B_pad, T_pad) != (B, T):
        # Padded batch rows / time steps are computed and dropped; padded time
        # steps come *after* the real ones, so they cannot perturb real outputs.
        x = jnp.pad(x, ((0, B_pad - B), (0, 0), (0, T_pad - T)))

    w = jnp.asarray(weight, jnp.float32).reshape(2, F, 1)   # (F, 1) per neuron
    b = jnp.asarray(bias, jnp.float32).reshape(2)
    # snntorch clamps a learned beta to [0, 1] inside the state update.
    beta_arr = jnp.clip(jnp.asarray([beta], dtype=jnp.float32), 0.0, 1.0)

    grid = (B_pad // bt, T_pad // Tt)         # batch outer (parallel), time inner

    # VMEM budget derived from the tile footprint (double-buffered x and spike
    # blocks + current planes + state), with a floor above v5e's 16 MiB default
    # and a cap inside v7x's 64 MiB physical VMEM.
    f_pad = _round_up(F, 8)
    tile_bytes = 4 * (2 * bt * f_pad * Tt          # x block (double buffered)
                      + 2 * 2 * Tt * bt            # two spike blocks (dbuf)
                      + 2 * Tt * bt                # two current scratch planes
                      + 4 * bt                     # mem / last-spike state
                      + 2 * 2 * f_pad * 128)       # weight block (lane padded)
    vmem_limit = int(min(max(2 * tile_bytes, 32 * 1024 * 1024), 64 * 1024 * 1024))

    smem = pltpu.MemorySpace.SMEM
    out0, out1 = pl.pallas_call(
        _snn_lif_kernel,
        out_shape=(jax.ShapeDtypeStruct((T_pad, B_pad), jnp.float32),
                   jax.ShapeDtypeStruct((T_pad, B_pad), jnp.float32)),
        grid=grid,
        in_specs=[
            pl.BlockSpec(memory_space=smem),                      # beta (scalar)
            pl.BlockSpec(memory_space=smem),                      # bias (2 scalars)
            pl.BlockSpec((bt, F, Tt), lambda i, t: (i, 0, t)),    # x, native layout
            pl.BlockSpec((2, F, 1), lambda i, t: (0, 0, 0)),      # weight (replicated)
        ],
        out_specs=(
            pl.BlockSpec((Tt, bt), lambda i, t: (t, i)),          # spikes, neuron 0
            pl.BlockSpec((Tt, bt), lambda i, t: (t, i)),          # spikes, neuron 1
        ),
        scratch_shapes=[
            pltpu.VMEM((Tt, bt), jnp.float32),                    # cur, neuron 0
            pltpu.VMEM((Tt, bt), jnp.float32),                    # cur, neuron 1
            pltpu.VMEM((1, bt), jnp.float32),                     # mem, neuron 0
            pltpu.VMEM((1, bt), jnp.float32),                     # mem, neuron 1
            pltpu.VMEM((1, bt), jnp.float32),                     # last spike, n0
            pltpu.VMEM((1, bt), jnp.float32),                     # last spike, n1
        ],
        compiler_params=pltpu.CompilerParams(
            dimension_semantics=("parallel", "arbitrary"),
            vmem_limit_bytes=vmem_limit,
        ),
    )(beta_arr, b, x, w)

    # Drop padding and stack neurons -> (T, B, 2) == torch.stack(spk_recording, 0).
    return jnp.stack([out0[:T, :B], out1[:T, :B]], axis=-1)


def snn_reference(x_bft, weight, bias, beta):
    """Pure-JAX reference of the PyTorch forward (for correctness checking)."""
    B, F, T = x_bft.shape
    beta = jnp.clip(jnp.float32(beta), 0.0, 1.0)
    mem = jnp.zeros((B, 2), jnp.float32)
    spks = []
    for t in range(T):
        cur = jnp.dot(x_bft[:, :, t].astype(jnp.float32), weight.T,
                      precision=jax.lax.Precision.HIGHEST) + bias
        rst = (mem > 1.0).astype(jnp.float32)
        mem = beta * mem + cur - rst
        spks.append((mem > 1.0).astype(jnp.float32))
    return jnp.stack(spks, axis=0)


if __name__ == "__main__":
    # ---- Test 1: canonical small shape (single tile). -----------------------
    batch, input_features, time_steps = 4, 16, 8
    beta = 0.9

    key = jax.random.PRNGKey(0)
    kx, kw, kb, kx2, kw2, kb2 = jax.random.split(key, 6)

    bound = 1.0 / (input_features ** 0.5)
    weight = jax.random.uniform(kw, (2, input_features), jnp.float32, -bound, bound)
    bias = jax.random.uniform(kb, (2,), jnp.float32, -bound, bound)
    # Scaled so the membrane actually crosses threshold and spikes occur.
    x = 2.5 * jax.random.normal(kx, (batch, input_features, time_steps), jnp.float32)

    out = jax.block_until_ready(snn_forward(x, weight, bias, beta))
    ref = jax.block_until_ready(snn_reference(x, weight, bias, beta))
    assert out.shape == (time_steps, batch, 2), out.shape
    assert jnp.allclose(out, ref, atol=1e-5), "Pallas kernel mismatch vs reference"

    # ---- Test 2: exercises batch/time tiling, padding and the state carry. --
    B2, F2, T2, beta2 = 136, 12, 260, 0.5
    bound2 = 1.0 / (F2 ** 0.5)
    weight2 = jax.random.uniform(kw2, (2, F2), jnp.float32, -bound2, bound2)
    bias2 = jax.random.uniform(kb2, (2,), jnp.float32, -bound2, bound2)
    x2 = 2.0 * jax.random.normal(kx2, (B2, F2, T2), jnp.float32)

    out2 = jax.block_until_ready(snn_forward(x2, weight2, bias2, beta2))
    ref2 = jax.block_until_ready(snn_reference(x2, weight2, bias2, beta2))
    assert out2.shape == (T2, B2, 2), out2.shape
    # Spikes are threshold crossings, so a membrane value within an ulp of the
    # threshold can flip between two equally-valid f32 summation orders; allow a
    # vanishing fraction of flips (a tiling/state bug would mismatch by >> 1%).
    mismatch_frac = float(jnp.mean(out2 != ref2))
    assert mismatch_frac <= 1e-4, f"spike mismatch fraction {mismatch_frac}"

    print("KERNEL_OK")
</pallas_src>

<mosaic_0001>
module attributes {stable_mosaic.version = 11 : i64} {
  func.func @_snn_lif_kernel(%arg0: i32, %arg1: i32, %arg2: memref<1xf32, #tpu.memory_space<smem>>, %arg3: memref<2xf32, #tpu.memory_space<smem>>, %arg4: memref<8x16x8xf32, #tpu.memory_space<vmem>>, %arg5: memref<2x16x1xf32, #tpu.memory_space<vmem>>, %arg6: memref<8x8xf32, #tpu.memory_space<vmem>>, %arg7: memref<8x8xf32, #tpu.memory_space<vmem>>, %arg8: memref<8x8xf32, #tpu.memory_space<vmem>>, %arg9: memref<8x8xf32, #tpu.memory_space<vmem>>, %arg10: memref<1x8xf32, #tpu.memory_space<vmem>>, %arg11: memref<1x8xf32, #tpu.memory_space<vmem>>, %arg12: memref<1x8xf32, #tpu.memory_space<vmem>>, %arg13: memref<1x8xf32, #tpu.memory_space<vmem>>) attributes {dimension_semantics = [#tpu.dimension_semantics<parallel>, #tpu.dimension_semantics<arbitrary>], iteration_bounds = array<i64: 1, 1>, scalar_prefetch = 0 : i64, scratch_operands = 6 : i64, tpu.core_type = #tpu.core_type<tc>, window_params = [{transform_indices = @transform_0, window_bounds = array<i64: 1>}, {transform_indices = @transform_1, window_bounds = array<i64: 2>}, {transform_indices = @transform_2, window_bounds = array<i64: 8, 16, 8>}, {pipeline_mode = #tpu.pipeline_mode<synchronous>, transform_indices = @transform_3, window_bounds = array<i64: 2, 16, 1>}, {transform_indices = @transform_4, window_bounds = array<i64: 8, 8>}, {transform_indices = @transform_5, window_bounds = array<i64: 8, 8>}]} {
    %c0 = arith.constant 0 : index
    %0 = memref.load %arg2[%c0] : memref<1xf32, #tpu.memory_space<smem>>
    %c0_0 = arith.constant 0 : index
    %c0_1 = arith.constant 0 : index
    %c0_2 = arith.constant 0 : index
    %1 = vector.load %arg4[%c0_0, %c0_1, %c0_2] : memref<8x16x8xf32, #tpu.memory_space<vmem>>, vector<8x16x8xf32>
    %c0_3 = arith.constant 0 : index
    %c0_4 = arith.constant 0 : index
    %c0_5 = arith.constant 0 : index
    %2 = vector.load %arg5[%c0_3, %c0_4, %c0_5] : memref<2x16x1xf32, #tpu.memory_space<vmem>>, vector<1x16x1xf32>
    %3 = vector.shape_cast %2 : vector<1x16x1xf32> to vector<16x1xf32>
    %4 = vector.shape_cast %3 : vector<16x1xf32> to vector<1x16x1xf32>
    %5 = vector.broadcast %4 : vector<1x16x1xf32> to vector<8x16x8xf32>
    %6 = arith.mulf %1, %5 : vector<8x16x8xf32>
    %cst = arith.constant dense<0.000000e+00> : vector<8x8xf32>
    %7 = vector.multi_reduction <add>, %6, %cst [1] : vector<8x16x8xf32> to vector<8x8xf32>
    %c1 = arith.constant 1 : index
    %c0_6 = arith.constant 0 : index
    %c0_7 = arith.constant 0 : index
    %8 = vector.load %arg5[%c1, %c0_6, %c0_7] : memref<2x16x1xf32, #tpu.memory_space<vmem>>, vector<1x16x1xf32>
    %9 = vector.shape_cast %8 : vector<1x16x1xf32> to vector<16x1xf32>
    %10 = vector.shape_cast %9 : vector<16x1xf32> to vector<1x16x1xf32>
    %11 = vector.broadcast %10 : vector<1x16x1xf32> to vector<8x16x8xf32>
    %12 = arith.mulf %1, %11 : vector<8x16x8xf32>
    %cst_8 = arith.constant dense<0.000000e+00> : vector<8x8xf32>
    %13 = vector.multi_reduction <add>, %12, %cst_8 [1] : vector<8x16x8xf32> to vector<8x8xf32>
    %14 = tpu.transpose %7, [1, 0] : vector<8x8xf32> -> vector<8x8xf32>
    %c0_9 = arith.constant 0 : index
    %15 = memref.load %arg3[%c0_9] : memref<2xf32, #tpu.memory_space<smem>>
    %16 = vector.broadcast %15 : f32 to vector<8x8xf32>
    %17 = arith.addf %14, %16 : vector<8x8xf32>
    %c0_10 = arith.constant 0 : index
    %c0_11 = arith.constant 0 : index
    %18 = vector.load %arg8[%c0_10, %c0_11] : memref<8x8xf32, #tpu.memory_space<vmem>>, vector<8x8xf32>
    tpu.vector_store %arg8[%c0_10, %c0_11], %17 {strides = array<i32>} : memref<8x8xf32, #tpu.memory_space<vmem>>, vector<8x8xf32>,
    %19 = tpu.transpose %13, [1, 0] : vector<8x8xf32> -> vector<8x8xf32>
    %c1_12 = arith.constant 1 : index
    %20 = memref.load %arg3[%c1_12] : memref<2xf32, #tpu.memory_space<smem>>
    %21 = vector.broadcast %20 : f32 to vector<8x8xf32>
    %22 = arith.addf %19, %21 : vector<8x8xf32>
    %c0_13 = arith.constant 0 : index
    %c0_14 = arith.constant 0 : index
    %23 = vector.load %arg9[%c0_13, %c0_14] : memref<8x8xf32, #tpu.memory_space<vmem>>, vector<8x8xf32>
    tpu.vector_store %arg9[%c0_13, %c0_14], %22 {strides = array<i32>} : memref<8x8xf32, #tpu.memory_space<vmem>>, vector<8x8xf32>,
    %c0_i32 = arith.constant 0 : i32
    %24 = arith.cmpi eq, %arg1, %c0_i32 : i32
    %25 = arith.extui %24 : i1 to i32
    %c0_i32_15 = arith.constant 0 : i32
    %26 = arith.cmpi ne, %25, %c0_i32_15 : i32
    scf.if %26 {
      %cst_66 = arith.constant 0.000000e+00 : f32
      %227 = vector.broadcast %cst_66 : f32 to vector<1x8xf32>
      %c0_67 = arith.constant 0 : index
      %c0_68 = arith.constant 0 : index
      %228 = vector.load %arg10[%c0_67, %c0_68] : memref<1x8xf32, #tpu.memory_space<vmem>>, vector<1x8xf32>
      tpu.vector_store %arg10[%c0_67, %c0_68], %227 {strides = array<i32>} : memref<1x8xf32, #tpu.memory_space<vmem>>, vector<1x8xf32>,
      %c0_69 = arith.constant 0 : index
      %c0_70 = arith.constant 0 : index
      %229 = vector.load %arg11[%c0_69, %c0_70] : memref<1x8xf32, #tpu.memory_space<vmem>>, vector<1x8xf32>
      tpu.vector_store %arg11[%c0_69, %c0_70], %227 {strides = array<i32>} : memref<1x8xf32, #tpu.memory_space<vmem>>, vector<1x8xf32>,
      %c0_71 = arith.constant 0 : index
      %c0_72 = arith.constant 0 : index
      %230 = vector.load %arg12[%c0_71, %c0_72] : memref<1x8xf32, #tpu.memory_space<vmem>>, vector<1x8xf32>
      tpu.vector_store %arg12[%c0_71, %c0_72], %227 {strides = array<i32>} : memref<1x8xf32, #tpu.memory_space<vmem>>, vector<1x8xf32>,
      %c0_73 = arith.constant 0 : index
      %c0_74 = arith.constant 0 : index
      %231 = vector.load %arg13[%c0_73, %c0_74] : memref<1x8xf32, #tpu.memory_space<vmem>>, vector<1x8xf32>
      tpu.vector_store %arg13[%c0_73, %c0_74], %227 {strides = array<i32>} : memref<1x8xf32, #tpu.memory_space<vmem>>, vector<1x8xf32>,
    } else {
    }
    %c0_16 = arith.constant 0 : index
    %c0_17 = arith.constant 0 : index
    %27 = vector.load %arg10[%c0_16, %c0_17] : memref<1x8xf32, #tpu.memory_space<vmem>>, vector<1x8xf32>
    %c0_18 = arith.constant 0 : index
    %c0_19 = arith.constant 0 : index
    %28 = vector.load %arg11[%c0_18, %c0_19] : memref<1x8xf32, #tpu.memory_space<vmem>>, vector<1x8xf32>
    %c0_20 = arith.constant 0 : index
    %c0_21 = arith.constant 0 : index
    %29 = vector.load %arg12[%c0_20, %c0_21] : memref<1x8xf32, #tpu.memory_space<vmem>>, vector<1x8xf32>
    %c0_22 = arith.constant 0 : index
    %c0_23 = arith.constant 0 : index
    %30 = vector.load %arg13[%c0_22, %c0_23] : memref<1x8xf32, #tpu.memory_space<vmem>>, vector<1x8xf32>
    %cst_24 = arith.constant 1.000000e+00 : f32
    %c0_i32_25 = arith.constant 0 : i32
    %31 = vector.broadcast %0 : f32 to vector<1x8xf32>
    %32 = arith.mulf %31, %27 : vector<1x8xf32>
    %33 = arith.index_cast %c0_i32_25 : i32 to index
    %c0_26 = arith.constant 0 : index
    %34 = vector.load %arg8[%33, %c0_26] : memref<8x8xf32, #tpu.memory_space<vmem>>, vector<1x8xf32>
    %35 = arith.addf %32, %34 : vector<1x8xf32>
    %36 = arith.subf %35, %29 : vector<1x8xf32>
    %37 = vector.broadcast %0 : f32 to vector<1x8xf32>
    %38 = arith.mulf %37, %28 : vector<1x8xf32>
    %39 = arith.index_cast %c0_i32_25 : i32 to index
    %c0_27 = arith.constant 0 : index
    %40 = vector.load %arg9[%39, %c0_27] : memref<8x8xf32, #tpu.memory_space<vmem>>, vector<1x8xf32>
    %41 = arith.addf %38, %40 : vector<1x8xf32>
    %42 = arith.subf %41, %30 : vector<1x8xf32>
    %43 = vector.broadcast %cst_24 : f32 to vector<1x8xf32>
    %44 = arith.cmpf ogt, %36, %43 : vector<1x8xf32>
    %45 = arith.extui %44 : vector<1x8xi1> to vector<1x8xi32>
    %46 = arith.sitofp %45 : vector<1x8xi32> to vector<1x8xf32>
    %47 = vector.broadcast %cst_24 : f32 to vector<1x8xf32>
    %48 = arith.cmpf ogt, %42, %47 : vector<1x8xf32>
    %49 = arith.extui %48 : vector<1x8xi1> to vector<1x8xi32>
    %50 = arith.sitofp %49 : vector<1x8xi32> to vector<1x8xf32>
    %51 = arith.index_cast %c0_i32_25 : i32 to index
    %c0_28 = arith.constant 0 : index
    %52 = vector.load %arg6[%51, %c0_28] : memref<8x8xf32, #tpu.memory_space<vmem>>, vector<1x8xf32>
    tpu.vector_store %arg6[%51, %c0_28], %46 {strides = array<i32>} : memref<8x8xf32, #tpu.memory_space<vmem>>, vector<1x8xf32>,
    %53 = arith.index_cast %c0_i32_25 : i32 to index
    %c0_29 = arith.constant 0 : index
    %54 = vector.load %arg7[%53, %c0_29] : memref<8x8xf32, #tpu.memory_space<vmem>>, vector<1x8xf32>
    tpu.vector_store %arg7[%53, %c0_29], %50 {strides = array<i32>} : memref<8x8xf32, #tpu.memory_space<vmem>>, vector<1x8xf32>,
    %c1_i32 = arith.constant 1 : i32
    %55 = vector.broadcast %0 : f32 to vector<1x8xf32>
    %56 = arith.mulf %55, %36 : vector<1x8xf32>
    %57 = arith.index_cast %c1_i32 : i32 to index
    %c0_30 = arith.constant 0 : index
    %58 = vector.load %arg8[%57, %c0_30] : memref<8x8xf32, #tpu.memory_space<vmem>>, vector<1x8xf32>
    %59 = arith.addf %56, %58 : vector<1x8xf32>
    %60 = arith.subf %59, %46 : vector<1x8xf32>
    %61 = vector.broadcast %0 : f32 to vector<1x8xf32>
    %62 = arith.mulf %61, %42 : vector<1x8xf32>
    %63 = arith.index_cast %c1_i32 : i32 to index
    %c0_31 = arith.constant 0 : index
    %64 = vector.load %arg9[%63, %c0_31] : memref<8x8xf32, #tpu.memory_space<vmem>>, vector<1x8xf32>
    %65 = arith.addf %62, %64 : vector<1x8xf32>
    %66 = arith.subf %65, %50 : vector<1x8xf32>
    %67 = vector.broadcast %cst_24 : f32 to vector<1x8xf32>
    %68 = arith.cmpf ogt, %60, %67 : vector<1x8xf32>
    %69 = arith.extui %68 : vector<1x8xi1> to vector<1x8xi32>
    %70 = arith.sitofp %69 : vector<1x8xi32> to vector<1x8xf32>
    %71 = vector.broadcast %cst_24 : f32 to vector<1x8xf32>
    %72 = arith.cmpf ogt, %66, %71 : vector<1x8xf32>
    %73 = arith.extui %72 : vector<1x8xi1> to vector<1x8xi32>
    %74 = arith.sitofp %73 : vector<1x8xi32> to vector<1x8xf32>
    %75 = arith.index_cast %c1_i32 : i32 to index
    %c0_32 = arith.constant 0 : index
    %76 = vector.load %arg6[%75, %c0_32] : memref<8x8xf32, #tpu.memory_space<vmem>>, vector<1x8xf32>
    tpu.vector_store %arg6[%75, %c0_32], %70 {strides = array<i32>} : memref<8x8xf32, #tpu.memory_space<vmem>>, vector<1x8xf32>,
    %77 = arith.index_cast %c1_i32 : i32 to index
    %c0_33 = arith.constant 0 : index
    %78 = vector.load %arg7[%77, %c0_33] : memref<8x8xf32, #tpu.memory_space<vmem>>, vector<1x8xf32>
    tpu.vector_store %arg7[%77, %c0_33], %74 {strides = array<i32>} : memref<8x8xf32, #tpu.memory_space<vmem>>, vector<1x8xf32>,
    %c2_i32 = arith.constant 2 : i32
    %79 = vector.broadcast %0 : f32 to vector<1x8xf32>
    %80 = arith.mulf %79, %60 : vector<1x8xf32>
    %81 = arith.index_cast %c2_i32 : i32 to index
    %c0_34 = arith.constant 0 : index
    %82 = vector.load %arg8[%81, %c0_34] : memref<8x8xf32, #tpu.memory_space<vmem>>, vector<1x8xf32>
    %83 = arith.addf %80, %82 : vector<1x8xf32>
    %84 = arith.subf %83, %70 : vector<1x8xf32>
    %85 = vector.broadcast %0 : f32 to vector<1x8xf32>
    %86 = arith.mulf %85, %66 : vector<1x8xf32>
    %87 = arith.index_cast %c2_i32 : i32 to index
    %c0_35 = arith.constant 0 : index
    %88 = vector.load %arg9[%87, %c0_35] : memref<8x8xf32, #tpu.memory_space<vmem>>, vector<1x8xf32>
    %89 = arith.addf %86, %88 : vector<1x8xf32>
    %90 = arith.subf %89, %74 : vector<1x8xf32>
    %91 = vector.broadcast %cst_24 : f32 to vector<1x8xf32>
    %92 = arith.cmpf ogt, %84, %91 : vector<1x8xf32>
    %93 = arith.extui %92 : vector<1x8xi1> to vector<1x8xi32>
    %94 = arith.sitofp %93 : vector<1x8xi32> to vector<1x8xf32>
    %95 = vector.broadcast %cst_24 : f32 to vector<1x8xf32>
    %96 = arith.cmpf ogt, %90, %95 : vector<1x8xf32>
    %97 = arith.extui %96 : vector<1x8xi1> to vector<1x8xi32>
    %98 = arith.sitofp %97 : vector<1x8xi32> to vector<1x8xf32>
    %99 = arith.index_cast %c2_i32 : i32 to index
    %c0_36 = arith.constant 0 : index
    %100 = vector.load %arg6[%99, %c0_36] : memref<8x8xf32, #tpu.memory_space<vmem>>, vector<1x8xf32>
    tpu.vector_store %arg6[%99, %c0_36], %94 {strides = array<i32>} : memref<8x8xf32, #tpu.memory_space<vmem>>, vector<1x8xf32>,
    %101 = arith.index_cast %c2_i32 : i32 to index
    %c0_37 = arith.constant 0 : index
    %102 = vector.load %arg7[%101, %c0_37] : memref<8x8xf32, #tpu.memory_space<vmem>>, vector<1x8xf32>
    tpu.vector_store %arg7[%101, %c0_37], %98 {strides = array<i32>} : memref<8x8xf32, #tpu.memory_space<vmem>>, vector<1x8xf32>,
    %c3_i32 = arith.constant 3 : i32
    %103 = vector.broadcast %0 : f32 to vector<1x8xf32>
    %104 = arith.mulf %103, %84 : vector<1x8xf32>
    %105 = arith.index_cast %c3_i32 : i32 to index
    %c0_38 = arith.constant 0 : index
    %106 = vector.load %arg8[%105, %c0_38] : memref<8x8xf32, #tpu.memory_space<vmem>>, vector<1x8xf32>
    %107 = arith.addf %104, %106 : vector<1x8xf32>
    %108 = arith.subf %107, %94 : vector<1x8xf32>
    %109 = vector.broadcast %0 : f32 to vector<1x8xf32>
    %110 = arith.mulf %109, %90 : vector<1x8xf32>
    %111 = arith.index_cast %c3_i32 : i32 to index
    %c0_39 = arith.constant 0 : index
    %112 = vector.load %arg9[%111, %c0_39] : memref<8x8xf32, #tpu.memory_space<vmem>>, vector<1x8xf32>
    %113 = arith.addf %110, %112 : vector<1x8xf32>
    %114 = arith.subf %113, %98 : vector<1x8xf32>
    %115 = vector.broadcast %cst_24 : f32 to vector<1x8xf32>
    %116 = arith.cmpf ogt, %108, %115 : vector<1x8xf32>
    %117 = arith.extui %116 : vector<1x8xi1> to vector<1x8xi32>
    %118 = arith.sitofp %117 : vector<1x8xi32> to vector<1x8xf32>
    %119 = vector.broadcast %cst_24 : f32 to vector<1x8xf32>
    %120 = arith.cmpf ogt, %114, %119 : vector<1x8xf32>
    %121 = arith.extui %120 : vector<1x8xi1> to vector<1x8xi32>
    %122 = arith.sitofp %121 : vector<1x8xi32> to vector<1x8xf32>
    %123 = arith.index_cast %c3_i32 : i32 to index
    %c0_40 = arith.constant 0 : index
    %124 = vector.load %arg6[%123, %c0_40] : memref<8x8xf32, #tpu.memory_space<vmem>>, vector<1x8xf32>
    tpu.vector_store %arg6[%123, %c0_40], %118 {strides = array<i32>} : memref<8x8xf32, #tpu.memory_space<vmem>>, vector<1x8xf32>,
    %125 = arith.index_cast %c3_i32 : i32 to index
    %c0_41 = arith.constant 0 : index
    %126 = vector.load %arg7[%125, %c0_41] : memref<8x8xf32, #tpu.memory_space<vmem>>, vector<1x8xf32>
    tpu.vector_store %arg7[%125, %c0_41], %122 {strides = array<i32>} : memref<8x8xf32, #tpu.memory_space<vmem>>, vector<1x8xf32>,
    %c4_i32 = arith.constant 4 : i32
    %127 = vector.broadcast %0 : f32 to vector<1x8xf32>
    %128 = arith.mulf %127, %108 : vector<1x8xf32>
    %129 = arith.index_cast %c4_i32 : i32 to index
    %c0_42 = arith.constant 0 : index
    %130 = vector.load %arg8[%129, %c0_42] : memref<8x8xf32, #tpu.memory_space<vmem>>, vector<1x8xf32>
    %131 = arith.addf %128, %130 : vector<1x8xf32>
    %132 = arith.subf %131, %118 : vector<1x8xf32>
    %133 = vector.broadcast %0 : f32 to vector<1x8xf32>
    %134 = arith.mulf %133, %114 : vector<1x8xf32>
    %135 = arith.index_cast %c4_i32 : i32 to index
    %c0_43 = arith.constant 0 : index
    %136 = vector.load %arg9[%135, %c0_43] : memref<8x8xf32, #tpu.memory_space<vmem>>, vector<1x8xf32>
    %137 = arith.addf %134, %136 : vector<1x8xf32>
    %138 = arith.subf %137, %122 : vector<1x8xf32>
    %139 = vector.broadcast %cst_24 : f32 to vector<1x8xf32>
    %140 = arith.cmpf ogt, %132, %139 : vector<1x8xf32>
    %141 = arith.extui %140 : vector<1x8xi1> to vector<1x8xi32>
    %142 = arith.sitofp %141 : vector<1x8xi32> to vector<1x8xf32>
    %143 = vector.broadcast %cst_24 : f32 to vector<1x8xf32>
    %144 = arith.cmpf ogt, %138, %143 : vector<1x8xf32>
    %145 = arith.extui %144 : vector<1x8xi1> to vector<1x8xi32>
    %146 = arith.sitofp %145 : vector<1x8xi32> to vector<1x8xf32>
    %147 = arith.index_cast %c4_i32 : i32 to index
    %c0_44 = arith.constant 0 : index
    %148 = vector.load %arg6[%147, %c0_44] : memref<8x8xf32, #tpu.memory_space<vmem>>, vector<1x8xf32>
    tpu.vector_store %arg6[%147, %c0_44], %142 {strides = array<i32>} : memref<8x8xf32, #tpu.memory_space<vmem>>, vector<1x8xf32>,
    %149 = arith.index_cast %c4_i32 : i32 to index
    %c0_45 = arith.constant 0 : index
    %150 = vector.load %arg7[%149, %c0_45] : memref<8x8xf32, #tpu.memory_space<vmem>>, vector<1x8xf32>
    tpu.vector_store %arg7[%149, %c0_45], %146 {strides = array<i32>} : memref<8x8xf32, #tpu.memory_space<vmem>>, vector<1x8xf32>,
    %c5_i32 = arith.constant 5 : i32
    %151 = vector.broadcast %0 : f32 to vector<1x8xf32>
    %152 = arith.mulf %151, %132 : vector<1x8xf32>
    %153 = arith.index_cast %c5_i32 : i32 to index
    %c0_46 = arith.constant 0 : index
    %154 = vector.load %arg8[%153, %c0_46] : memref<8x8xf32, #tpu.memory_space<vmem>>, vector<1x8xf32>
    %155 = arith.addf %152, %154 : vector<1x8xf32>
    %156 = arith.subf %155, %142 : vector<1x8xf32>
    %157 = vector.broadcast %0 : f32 to vector<1x8xf32>
    %158 = arith.mulf %157, %138 : vector<1x8xf32>
    %159 = arith.index_cast %c5_i32 : i32 to index
    %c0_47 = arith.constant 0 : index
    %160 = vector.load %arg9[%159, %c0_47] : memref<8x8xf32, #tpu.memory_space<vmem>>, vector<1x8xf32>
    %161 = arith.addf %158, %160 : vector<1x8xf32>
    %162 = arith.subf %161, %146 : vector<1x8xf32>
    %163 = vector.broadcast %cst_24 : f32 to vector<1x8xf32>
    %164 = arith.cmpf ogt, %156, %163 : vector<1x8xf32>
    %165 = arith.extui %164 : vector<1x8xi1> to vector<1x8xi32>
    %166 = arith.sitofp %165 : vector<1x8xi32> to vector<1x8xf32>
    %167 = vector.broadcast %cst_24 : f32 to vector<1x8xf32>
    %168 = arith.cmpf ogt, %162, %167 : vector<1x8xf32>
    %169 = arith.extui %168 : vector<1x8xi1> to vector<1x8xi32>
    %170 = arith.sitofp %169 : vector<1x8xi32> to vector<1x8xf32>
    %171 = arith.index_cast %c5_i32 : i32 to index
    %c0_48 = arith.constant 0 : index
    %172 = vector.load %arg6[%171, %c0_48] : memref<8x8xf32, #tpu.memory_space<vmem>>, vector<1x8xf32>
    tpu.vector_store %arg6[%171, %c0_48], %166 {strides = array<i32>} : memref<8x8xf32, #tpu.memory_space<vmem>>, vector<1x8xf32>,
    %173 = arith.index_cast %c5_i32 : i32 to index
    %c0_49 = arith.constant 0 : index
    %174 = vector.load %arg7[%173, %c0_49] : memref<8x8xf32, #tpu.memory_space<vmem>>, vector<1x8xf32>
    tpu.vector_store %arg7[%173, %c0_49], %170 {strides = array<i32>} : memref<8x8xf32, #tpu.memory_space<vmem>>, vector<1x8xf32>,
    %c6_i32 = arith.constant 6 : i32
    %175 = vector.broadcast %0 : f32 to vector<1x8xf32>
    %176 = arith.mulf %175, %156 : vector<1x8xf32>
    %177 = arith.index_cast %c6_i32 : i32 to index
    %c0_50 = arith.constant 0 : index
    %178 = vector.load %arg8[%177, %c0_50] : memref<8x8xf32, #tpu.memory_space<vmem>>, vector<1x8xf32>
    %179 = arith.addf %176, %178 : vector<1x8xf32>
    %180 = arith.subf %179, %166 : vector<1x8xf32>
    %181 = vector.broadcast %0 : f32 to vector<1x8xf32>
    %182 = arith.mulf %181, %162 : vector<1x8xf32>
    %183 = arith.index_cast %c6_i32 : i32 to index
    %c0_51 = arith.constant 0 : index
    %184 = vector.load %arg9[%183, %c0_51] : memref<8x8xf32, #tpu.memory_space<vmem>>, vector<1x8xf32>
    %185 = arith.addf %182, %184 : vector<1x8xf32>
    %186 = arith.subf %185, %170 : vector<1x8xf32>
    %187 = vector.broadcast %cst_24 : f32 to vector<1x8xf32>
    %188 = arith.cmpf ogt, %180, %187 : vector<1x8xf32>
    %189 = arith.extui %188 : vector<1x8xi1> to vector<1x8xi32>
    %190 = arith.sitofp %189 : vector<1x8xi32> to vector<1x8xf32>
    %191 = vector.broadcast %cst_24 : f32 to vector<1x8xf32>
    %192 = arith.cmpf ogt, %186, %191 : vector<1x8xf32>
    %193 = arith.extui %192 : vector<1x8xi1> to vector<1x8xi32>
    %194 = arith.sitofp %193 : vector<1x8xi32> to vector<1x8xf32>
    %195 = arith.index_cast %c6_i32 : i32 to index
    %c0_52 = arith.constant 0 : index
    %196 = vector.load %arg6[%195, %c0_52] : memref<8x8xf32, #tpu.memory_space<vmem>>, vector<1x8xf32>
    tpu.vector_store %arg6[%195, %c0_52], %190 {strides = array<i32>} : memref<8x8xf32, #tpu.memory_space<vmem>>, vector<1x8xf32>,
    %197 = arith.index_cast %c6_i32 : i32 to index
    %c0_53 = arith.constant 0 : index
    %198 = vector.load %arg7[%197, %c0_53] : memref<8x8xf32, #tpu.memory_space<vmem>>, vector<1x8xf32>
    tpu.vector_store %arg7[%197, %c0_53], %194 {strides = array<i32>} : memref<8x8xf32, #tpu.memory_space<vmem>>, vector<1x8xf32>,
    %c7_i32 = arith.constant 7 : i32
    %199 = vector.broadcast %0 : f32 to vector<1x8xf32>
    %200 = arith.mulf %199, %180 : vector<1x8xf32>
    %201 = arith.index_cast %c7_i32 : i32 to index
    %c0_54 = arith.constant 0 : index
    %202 = vector.load %arg8[%201, %c0_54] : memref<8x8xf32, #tpu.memory_space<vmem>>, vector<1x8xf32>
    %203 = arith.addf %200, %202 : vector<1x8xf32>
    %204 = arith.subf %203, %190 : vector<1x8xf32>
    %205 = vector.broadcast %0 : f32 to vector<1x8xf32>
    %206 = arith.mulf %205, %186 : vector<1x8xf32>
    %207 = arith.index_cast %c7_i32 : i32 to index
    %c0_55 = arith.constant 0 : index
    %208 = vector.load %arg9[%207, %c0_55] : memref<8x8xf32, #tpu.memory_space<vmem>>, vector<1x8xf32>
    %209 = arith.addf %206, %208 : vector<1x8xf32>
    %210 = arith.subf %209, %194 : vector<1x8xf32>
    %211 = vector.broadcast %cst_24 : f32 to vector<1x8xf32>
    %212 = arith.cmpf ogt, %204, %211 : vector<1x8xf32>
    %213 = arith.extui %212 : vector<1x8xi1> to vector<1x8xi32>
    %214 = arith.sitofp %213 : vector<1x8xi32> to vector<1x8xf32>
    %215 = vector.broadcast %cst_24 : f32 to vector<1x8xf32>
    %216 = arith.cmpf ogt, %210, %215 : vector<1x8xf32>
    %217 = arith.extui %216 : vector<1x8xi1> to vector<1x8xi32>
    %218 = arith.sitofp %217 : vector<1x8xi32> to vector<1x8xf32>
    %219 = arith.index_cast %c7_i32 : i32 to index
    %c0_56 = arith.constant 0 : index
    %220 = vector.load %arg6[%219, %c0_56] : memref<8x8xf32, #tpu.memory_space<vmem>>, vector<1x8xf32>
    tpu.vector_store %arg6[%219, %c0_56], %214 {strides = array<i32>} : memref<8x8xf32, #tpu.memory_space<vmem>>, vector<1x8xf32>,
    %221 = arith.index_cast %c7_i32 : i32 to index
    %c0_57 = arith.constant 0 : index
    %222 = vector.load %arg7[%221, %c0_57] : memref<8x8xf32, #tpu.memory_space<vmem>>, vector<1x8xf32>
    tpu.vector_store %arg7[%221, %c0_57], %218 {strides = array<i32>} : memref<8x8xf32, #tpu.memory_space<vmem>>, vector<1x8xf32>,
    %c8_i32 = arith.constant 8 : i32
    %c0_58 = arith.constant 0 : index
    %c0_59 = arith.constant 0 : index
    %223 = vector.load %arg10[%c0_58, %c0_59] : memref<1x8xf32, #tpu.memory_space<vmem>>, vector<1x8xf32>
    tpu.vector_store %arg10[%c0_58, %c0_59], %204 {strides = array<i32>} : memref<1x8xf32, #tpu.memory_space<vmem>>, vector<1x8xf32>,
    %c0_60 = arith.constant 0 : index
    %c0_61 = arith.constant 0 : index
    %224 = vector.load %arg11[%c0_60, %c0_61] : memref<1x8xf32, #tpu.memory_space<vmem>>, vector<1x8xf32>
    tpu.vector_store %arg11[%c0_60, %c0_61], %210 {strides = array<i32>} : memref<1x8xf32, #tpu.memory_space<vmem>>, vector<1x8xf32>,
    %c0_62 = arith.constant 0 : index
    %c0_63 = arith.constant 0 : index
    %225 = vector.load %arg12[%c0_62, %c0_63] : memref<1x8xf32, #tpu.memory_space<vmem>>, vector<1x8xf32>
    tpu.vector_store %arg12[%c0_62, %c0_63], %214 {strides = array<i32>} : memref<1x8xf32, #tpu.memory_space<vmem>>, vector<1x8xf32>,
    %c0_64 = arith.constant 0 : index
    %c0_65 = arith.constant 0 : index
    %226 = vector.load %arg13[%c0_64, %c0_65] : memref<1x8xf32, #tpu.memory_space<vmem>>, vector<1x8xf32>
    tpu.vector_store %arg13[%c0_64, %c0_65], %218 {strides = array<i32>} : memref<1x8xf32, #tpu.memory_space<vmem>>, vector<1x8xf32>,
    return
  }
  func.func @transform_0(%arg0: i32, %arg1: i32) -> i32 {
    %c0_i32 = arith.constant 0 : i32
    %c0_i32_0 = arith.constant 0 : i32
    return %c0_i32 : i32
  }
  func.func @transform_1(%arg0: i32, %arg1: i32) -> i32 {
    %c0_i32 = arith.constant 0 : i32
    %c0_i32_0 = arith.constant 0 : i32
    return %c0_i32 : i32
  }
  func.func @transform_2(%arg0: i32, %arg1: i32) -> (i32, i32, i32) {
    %c0_i32 = arith.constant 0 : i32
    %c0_i32_0 = arith.constant 0 : i32
    return %arg0, %c0_i32, %arg1 : i32, i32, i32
  }
  func.func @transform_3(%arg0: i32, %arg1: i32) -> (i32, i32, i32) {
    %c0_i32 = arith.constant 0 : i32
    %c0_i32_0 = arith.constant 0 : i32
    %c0_i32_1 = arith.constant 0 : i32
    %c0_i32_2 = arith.constant 0 : i32
    return %c0_i32, %c0_i32_0, %c0_i32_1 : i32, i32, i32
  }
  func.func @transform_4(%arg0: i32, %arg1: i32) -> (i32, i32) {
    %c0_i32 = arith.constant 0 : i32
    return %arg1, %arg0 : i32, i32
  }
  func.func @transform_5(%arg0: i32, %arg1: i32) -> (i32, i32) {
    %c0_i32 = arith.constant 0 : i32
    return %arg1, %arg0 : i32, i32
  }
}

</mosaic_0001>

<bundles_post_ra>
// kernel: tpu_custom_call.1
= control target key start
LH: loop header
LB: loop body
LE: loop exit
PB: predicated region body
PF: predicated region fallthrough
CT: control target
= control target key end

     0   :  { %12 = vsyncpa [#allocation11], 0  ;;  %s949_s0 = inlined_call_operand.<no memory space> [shape: f32[1], index: 0, kind: input, shape index: {}]   ;;  %s950_s1 = inlined_call_operand.vmem [shape: f32[2], index: 1, kind: input, shape index: {}]   ;;  %s951_s2 = inlined_call_operand.vmem [shape: f32[8,16,8], index: 2, kind: input, shape index: {}]   ;;  %s952_s3 = inlined_call_operand.vmem [shape: f32[2,16,1], index: 3, kind: input, shape index: {}]   ;;  %s953_s4 = inlined_call_operand.hbm [shape: f32[8,8], index: 4, kind: output, shape index: {0}]   ;;  %s954_s5 = inlined_call_operand.hbm [shape: f32[8,8], index: 5, kind: output, shape index: {1}]  }
   0x1   :  { %13 = vsyncpa [#allocation10], 0 }
   0x2   :  { %14 = vsyncpa [#allocation14], 0  ;;  %s23_s20 = sshll.u32 %s950_s1, 4  ;;  %s24_s20 = int_to_ptr.vmem [resolvable:$true] %s23_s20 }
   0x3   :  { %s567_s21 = scalar_lea.vmem %s24_s20, 16  ;;  %p572_p1 = scmp.lt.s32.totalorder %s24_s20, %s24_s20 }
   0x4   :  { %p568_p0 = scmp.ne.s32.totalorder %s24_s20, %s567_s21  ;;  %p573_p2 = scmp.lt.s32.totalorder %s567_s21, %s567_s21 }
   0x6   :  { %p574_p3 = por %p573_p2, %p572_p1 }
   0x8   :  { %p575_p4 = pnand %p574_p3, %p568_p0 }
   0xa   :  { %578 = shalt.err (!%p575_p4)
}
   0xb   :  { %s629_s22 = smov [#allocation9]  }
   0xc   :  { %26 = dma.vmem_to_smem %s24_s20, 16, %s629_s22, [#allocation11]  }
   0xd   :  { %623 = dma.done.wait [#allocation11], 16  }
   0xe   :  { %624 = vsyncadd [#allocation11], 4294967280 }
   0xf   :  { %34 = sfence }
  0x10   :  { %v541_v0 = vld [vmem:[%s952_s3 + $0x10] sm:$0xff]  ;;  %v52_v1 = vld [vmem:[%s952_s3] sm:$0xff]  ;;  %v630_v2 = vmov 0   ;;  %v542_v3 = vld [vmem:[%s952_s3 + $0x18] sm:$0xff]  ;;  %vm80_vm0 = vcmask 64512   ;;  %vm262_vm1 = vcmask 1041409  }
  0x11   :  { %566 = vset.pattern.permute.xlu1 %v630_v2  ;;  %565 = vset.pattern.permute.xlu0 %v630_v2  ;;  %v53_v4 = vld [vmem:[%s952_s3 + $0x8] sm:$0xff]  ;;  %v36_v5 = vld [vmem:[%s951_s2] sm:$0xff]  ;;  %v38_v6 = vld [vmem:[%s951_s2 + $0x10] sm:$0xff]  ;;  %vm264_vm2 = vcmask 1042434   ;;  %vm266_vm3 = vcmask 1043459   ;;  %vm268_vm4 = vcmask 1044484  }
  0x12   :  { %158 = vperm.xlu1 %566, %v541_v0   ;;  %56 = vperm.xlu0 %565, %v52_v1   ;;  %v40_v7 = vld [vmem:[%s951_s2 + $0x20] sm:$0xff]  ;;  %v42_v8 = vld [vmem:[%s951_s2 + $0x30] sm:$0xff]  ;;  %v37_v20 = vld [vmem:[%s951_s2 + $0x8] sm:$0xff]  ;;  %vm270_vm5 = vcmask 1045509   ;;  %vm272_vm6 = vcmask 1046534   ;;  %vm274_vm7 = vcmask 1047559  }
  0x13   :  { %v44_v9 = vld [vmem:[%s951_s2 + $0x40] sm:$0xff]  ;;  %v39_v21 = vld [vmem:[%s951_s2 + $0x18] sm:$0xff]  ;;  %v41_v22 = vld [vmem:[%s951_s2 + $0x28] sm:$0xff]  ;;  %vm369_vm8 = vcmask 57344   ;;  %s309_s12 = sld [smem:[#allocation9]] }
  0x14   :  { %v43_v27 = vld [vmem:[%s951_s2 + $0x38] sm:$0xff]  ;;  %v45_v28 = vld [vmem:[%s951_s2 + $0x48] sm:$0xff]  ;;  %v748_v51 = vld [vmem:[%s951_s2 + $0x50] sm:$0xff] }
  0x15   :  { %v759_v56 = vld [vmem:[%s951_s2 + $0x58] sm:$0xff]  ;;  %v764_v57 = vld [vmem:[%s951_s2 + $0x60] sm:$0xff]  ;;  %v772_v62 = vld [vmem:[%s951_s2 + $0x68] sm:$0xff] }
  0x16   :  { %163 = vperm.xlu1 %566, %v542_v3   ;;  %61 = vperm.xlu0 %565, %v53_v4   ;;  %v777_v63 = vld [vmem:[%s951_s2 + $0x70] sm:$0xff]  ;;  %v782_v0 = vld [vmem:[%s951_s2 + $0x78] sm:$0xff]  ;;  %s543_s2 = sld [smem:[#allocation9 + $0x1]] }
  0x91   :  { %v694_v10 = vpop.permute.xlu1 %158  ;;  %v696_v11 = vpop.permute.xlu0 %56 }
  0x92   :  { %v166_v12 = vmul.f32 %v694_v10, %v36_v5  ;;  %v168_v13 = vmul.f32 %v694_v10, %v38_v6  ;;  %v170_v14 = vmul.f32 %v694_v10, %v40_v7  ;;  %v172_v15 = vmul.f32 %v694_v10, %v42_v8 }
  0x93   :  { %v703_v16 = vmul.f32 %v694_v10, %v44_v9  ;;  %v64_v17 = vmul.f32 %v696_v11, %v36_v5  ;;  %v66_v18 = vmul.f32 %v696_v11, %v38_v6  ;;  %v68_v19 = vmul.f32 %v696_v11, %v40_v7 }
  0x94   :  { %v182_v23 = vsel %vm80_vm0, %v166_v12, 0.0  ;;  %v191_v24 = vsel %vm80_vm0, %v168_v13, 0.0  ;;  %v200_v25 = vsel %vm80_vm0, %v170_v14, 0.0  ;;  %v209_v26 = vsel %vm80_vm0, %v172_v15, 0.0 }
  0x95   :  { %v70_v29 = vmul.f32 %v696_v11, %v42_v8  ;;  %v729_v30 = vmul.f32 %v696_v11, %v44_v9  ;;  %v81_v31 = vsel %vm80_vm0, %v64_v17, 0.0  ;;  %v90_v32 = vsel %vm80_vm0, %v66_v18, 0.0  ;;  %v164_v33 = vpop.permute.xlu1 %163  ;;  %v733_v34 = vpop.permute.xlu0 %61 }
  0x96   :  { %v99_v35 = vsel %vm80_vm0, %v68_v19, 0.0  ;;  %v167_v36 = vmul.f32 %v164_v33, %v37_v20  ;;  %v169_v37 = vmul.f32 %v164_v33, %v39_v21  ;;  %v171_v38 = vmul.f32 %v164_v33, %v41_v22 }
  0x97   :  { %v737_v39 = vsel %vm80_vm0, %v70_v29, 0.0  ;;  %v173_v40 = vmul.f32 %v164_v33, %v43_v27  ;;  %v175_v41 = vmul.f32 %v164_v33, %v45_v28  ;;  %v65_v42 = vmul.f32 %v733_v34, %v37_v20 }
  0x98   :  { %v183_v43 = vsel %vm80_vm0, %v167_v36, 0.0  ;;  %v192_v44 = vsel %vm80_vm0, %v169_v37, 0.0  ;;  %v201_v45 = vsel %vm80_vm0, %v171_v38, 0.0  ;;  %v67_v46 = vmul.f32 %v733_v34, %v39_v21 }
  0x99   :  { %v184_v47 = vadd.f32 %v183_v43, %v182_v23  ;;  %v193_v48 = vadd.f32 %v192_v44, %v191_v24  ;;  %v202_v49 = vadd.f32 %v201_v45, %v200_v25  ;;  %v210_v50 = vsel %vm80_vm0, %v173_v40, 0.0 }
  0x9a   :  { %v69_v52 = vmul.f32 %v733_v34, %v41_v22  ;;  %v71_v53 = vmul.f32 %v733_v34, %v43_v27  ;;  %v753_v54 = vmul.f32 %v733_v34, %v45_v28  ;;  %v82_v55 = vsel %vm80_vm0, %v65_v42, 0.0 }
  0x9b   :  { %v185_v58 = vrot.slane %v184_v47, 4  ;;  %v194_v59 = vrot.slane %v193_v48, 4  ;;  %v766_v60 = vadd.f32 %v82_v55, %v81_v31  ;;  %v91_v61 = vsel %vm80_vm0, %v67_v46, 0.0 }
  0x9c   :  { %v784_v1 = vadd.f32 %v91_v61, %v90_v32  ;;  %v100_v2 = vsel %vm80_vm0, %v69_v52, 0.0  ;;  %v788_v3 = vsel %vm80_vm0, %v71_v53, 0.0  ;;  %v176_v4 = vmul.f32 %v694_v10, %v748_v51 }
  0x9d   :  { %v84_v5 = vrot.slane %v766_v60, 4  ;;  %v793_v6 = vadd.f32 %v100_v2, %v99_v35  ;;  %v177_v7 = vmul.f32 %v164_v33, %v759_v56  ;;  %v178_v8 = vmul.f32 %v694_v10, %v764_v57 }
  0x9e   :  { %v93_v9 = vrot.slane %v784_v1, 4  ;;  %v179_v12 = vmul.f32 %v164_v33, %v772_v62  ;;  %v180_v13 = vmul.f32 %v694_v10, %v777_v63  ;;  %v181_v14 = vmul.f32 %v164_v33, %v782_v0 }
  0x9f   :  { %v186_v15 = vadd.f32 %v185_v58, %v184_v47  ;;  %v195_v17 = vadd.f32 %v194_v59, %v193_v48  ;;  %v203_v18 = vrot.slane %v202_v49, 4  ;;  %v211_v19 = vadd.f32 %v210_v50, %v209_v26 }
  0xa0   :  { %v218_v20 = vsel %vm80_vm0, %v703_v16, 0.0  ;;  %v219_v21 = vsel %vm80_vm0, %v175_v41, 0.0  ;;  %v227_v22 = vsel %vm80_vm0, %v176_v4, 0.0  ;;  %v228_v23 = vsel %vm80_vm0, %v177_v7, 0.0 }
  0xa1   :  { %v187_v24 = vrot.slane %v186_v15, 2  ;;  %v196_v25 = vrot.slane %v195_v17, 2  ;;  %v204_v10 = vadd.f32 %v203_v18, %v202_v49  ;;  %v212_v27 = vrot.slane %v211_v19, 4 }
  0xa2   :  { %v220_v28 = vadd.f32 %v219_v21, %v218_v20  ;;  %v229_v29 = vadd.f32 %v228_v23, %v227_v22  ;;  %v236_v31 = vsel %vm80_vm0, %v178_v8, 0.0  ;;  %v237_v26 = vsel %vm80_vm0, %v179_v12, 0.0 }
  0xa3   :  { %v188_v32 = vadd.f32 %v187_v24, %v186_v15  ;;  %v197_v16 = vadd.f32 %v196_v25, %v195_v17  ;;  %v205_v33 = vrot.slane %v204_v10, 2  ;;  %v213_v35 = vadd.f32 %v212_v27, %v211_v19 }
  0xa4   :  { %v221_v36 = vrot.slane %v220_v28, 4  ;;  %v230_v37 = vrot.slane %v229_v29, 4  ;;  %v238_v38 = vadd.f32 %v237_v26, %v236_v31  ;;  %v245_v40 = vsel %vm80_vm0, %v180_v13, 0.0 }
  0xa5   :  { %v189_v41 = vrot.slane %v188_v32, 1  ;;  %v198_v42 = vrot.slane %v197_v16, 1  ;;  %v206_v43 = vadd.f32 %v205_v33, %v204_v10  ;;  %v214_v44 = vrot.slane %v213_v35, 2 }
  0xa6   :  { %v222_v45 = vadd.f32 %v221_v36, %v220_v28  ;;  %v231_v46 = vadd.f32 %v230_v37, %v229_v29  ;;  %v239_v47 = vrot.slane %v238_v38, 4  ;;  %v246_v48 = vsel %vm80_vm0, %v181_v14, 0.0 }
  0xa7   :  { %v190_v49 = vadd.f32 %v189_v41, %v188_v32  ;;  %v199_v50 = vadd.f32 %v198_v42, %v197_v16  ;;  %v207_v52 = vrot.slane %v206_v43, 1  ;;  %v215_v53 = vadd.f32 %v214_v44, %v213_v35 }
  0xa8   :  { %v223_v55 = vrot.slane %v222_v45, 2  ;;  %v232_v58 = vrot.slane %v231_v46, 2  ;;  %v240_v59 = vadd.f32 %v239_v47, %v238_v38  ;;  %v247_v61 = vadd.f32 %v246_v48, %v245_v40 }
  0xa9   :  { %v208_v2 = vadd.f32 %v207_v52, %v206_v43  ;;  %v216_v4 = vrot.slane %v215_v53, 1  ;;  %v321_v7 = vsel %vm262_vm1, %v199_v50, %v190_v49  ;;  %v74_v8 = vmul.f32 %v696_v11, %v748_v51 }
  0xaa   :  { %v224_v12 = vadd.f32 %v223_v55, %v222_v45  ;;  %v233_v13 = vadd.f32 %v232_v58, %v231_v46  ;;  %v241_v14 = vrot.slane %v240_v59, 2  ;;  %v248_v15 = vrot.slane %v247_v61, 4 }
  0xab   :  { %v217_v17 = vadd.f32 %v216_v4, %v215_v53  ;;  %v322_v18 = vsel %vm264_vm2, %v208_v2, %v321_v7  ;;  %v75_v19 = vmul.f32 %v733_v34, %v759_v56  ;;  %v76_v20 = vmul.f32 %v696_v11, %v764_v57 }
  0xac   :  { %v225_v21 = vrot.slane %v224_v12, 1  ;;  %v234_v22 = vrot.slane %v233_v13, 1  ;;  %v242_v23 = vadd.f32 %v241_v14, %v240_v59  ;;  %v249_v24 = vadd.f32 %v248_v15, %v247_v61 }
  0xad   :  { %v323_v51 = vsel %vm266_vm3, %v217_v17, %v322_v18  ;;  %v77_v25 = vmul.f32 %v733_v34, %v772_v62  ;;  %v78_v10 = vmul.f32 %v696_v11, %v777_v63  ;;  %v79_v27 = vmul.f32 %v733_v34, %v782_v0 }
  0xae   :  { %v226_v28 = vadd.f32 %v225_v21, %v224_v12  ;;  %v235_v56 = vadd.f32 %v234_v22, %v233_v13  ;;  %v243_v29 = vrot.slane %v242_v23, 1  ;;  %v250_v31 = vrot.slane %v249_v24, 2 }
  0xaf   :  { %v85_v57 = vadd.f32 %v84_v5, %v766_v60  ;;  %v94_v26 = vadd.f32 %v93_v9, %v784_v1  ;;  %v102_v62 = vrot.slane %v793_v6, 4  ;;  %v110_v11 = vadd.f32 %v788_v3, %v737_v39 }
  0xb0   :  { %v244_v63 = vadd.f32 %v243_v29, %v242_v23  ;;  %v251_v32 = vadd.f32 %v250_v31, %v249_v24  ;;  %v324_v34 = vsel %vm268_vm4, %v226_v28, %v323_v51  ;;  %v117_v0 = vsel %vm80_vm0, %v729_v30, 0.0 }
  0xb1   :  { %v325_v16 = vsel %vm270_vm5, %v235_v56, %v324_v34  ;;  %v86_v33 = vrot.slane %v85_v57, 2  ;;  %v95_v60 = vrot.slane %v94_v26, 2  ;;  %v103_v5 = vadd.f32 %v102_v62, %v793_v6 }
  0xb2   :  { %v252_v35 = vrot.slane %v251_v32, 1  ;;  %v326_v1 = vsel %vm272_vm6, %v244_v63, %v325_v16  ;;  %v111_v9 = vrot.slane %v110_v11, 4  ;;  %v118_v39 = vsel %vm80_vm0, %v753_v54, 0.0 }
  0xb3   :  { %v87_v3 = vadd.f32 %v86_v33, %v85_v57  ;;  %v96_v36 = vadd.f32 %v95_v60, %v94_v26  ;;  %v104_v37 = vrot.slane %v103_v5, 2  ;;  %v119_v38 = vadd.f32 %v118_v39, %v117_v0 }
  0xb4   :  { %v253_v40 = vadd.f32 %v252_v35, %v251_v32  ;;  %v112_v41 = vadd.f32 %v111_v9, %v110_v11  ;;  %v126_v30 = vsel %vm80_vm0, %v74_v8, 0.0  ;;  %v127_v42 = vsel %vm80_vm0, %v75_v19, 0.0 }
  0xb5   :  { %v88_v43 = vrot.slane %v87_v3, 1  ;;  %v97_v44 = vrot.slane %v96_v36, 1  ;;  %v105_v6 = vadd.f32 %v104_v37, %v103_v5  ;;  %v120_v45 = vrot.slane %v119_v38, 4 }
  0xb6   :  { %v327_v46 = vsel %vm274_vm7, %v253_v40, %v326_v1  ;;  %v113_v47 = vrot.slane %v112_v41, 2  ;;  %v128_v48 = vadd.f32 %v127_v42, %v126_v30  ;;  %v135_v54 = vsel %vm80_vm0, %v76_v20, 0.0 }
  0xb7   :  { %329 = vxpose.xlu1.b32.start.end [1/1] (short) (narrow) %v327_v46, 8  ;;  %v89_v49 = vadd.f32 %v88_v43, %v87_v3  ;;  %v98_v50 = vadd.f32 %v97_v44, %v96_v36  ;;  %v106_v52 = vrot.slane %v105_v6, 1  ;;  %v121_v53 = vadd.f32 %v120_v45, %v119_v38 }
  0xb8   :  { %v114_v55 = vadd.f32 %v113_v47, %v112_v41  ;;  %v129_v58 = vrot.slane %v128_v48, 4  ;;  %v136_v59 = vsel %vm80_vm0, %v77_v25, 0.0  ;;  %v144_v61 = vsel %vm80_vm0, %v78_v10, 0.0 }
  0xb9   :  { %v107_v2 = vadd.f32 %v106_v52, %v105_v6  ;;  %v122_v4 = vrot.slane %v121_v53, 2  ;;  %v137_v7 = vadd.f32 %v136_v59, %v135_v54  ;;  %v145_v8 = vsel %vm80_vm0, %v79_v27, 0.0 }
  0xba   :  { %v115_v12 = vrot.slane %v114_v55, 1  ;;  %v130_v13 = vadd.f32 %v129_v58, %v128_v48  ;;  %v146_v14 = vadd.f32 %v145_v8, %v144_v61  ;;  %v263_v15 = vsel %vm262_vm1, %v98_v50, %v89_v49 }
  0xbb   :  { %v123_v17 = vadd.f32 %v122_v4, %v121_v53  ;;  %v138_v18 = vrot.slane %v137_v7, 4  ;;  %v265_v19 = vsel %vm264_vm2, %v107_v2, %v263_v15  ;;  %v631_v60 = vmov 0.0  }
  0xbc   :  { %v116_v20 = vadd.f32 %v115_v12, %v114_v55  ;;  %v131_v21 = vrot.slane %v130_v13, 2  ;;  %v147_v22 = vrot.slane %v146_v14, 4  ;;  %370 = vst.msk [vmem:[#allocation4] sm:$0x1] %vm369_vm8, %v631_v60  ;;  %372 = vst.msk [vmem:[#allocation6] sm:$0x1] %vm369_vm8, %v631_v60  ;;  %v362_v5 = vstv %s543_s2 }
  0xbd   :  { %v124_v23 = vrot.slane %v123_v17, 1  ;;  %v139_v24 = vadd.f32 %v138_v18, %v137_v7  ;;  %371 = vst.msk [vmem:[#allocation5] sm:$0x1] %vm369_vm8, %v631_v60  ;;  %373 = vst.msk [vmem:[#allocation7] sm:$0x1] %vm369_vm8, %v631_v60  ;;  %v870_v9 = vstv %s949_s0  ;;  %v310_v30 = vstv %s309_s12  ;;  %s632_s0 = smov [#allocation13]  }
  0xbe   :  { %v132_v51 = vadd.f32 %v131_v21, %v130_v13  ;;  %v148_v25 = vadd.f32 %v147_v22, %v146_v14  ;;  %v267_v10 = vsel %vm266_vm3, %v116_v20, %v265_v19  ;;  %s528_s13 = sshll.u32 %s632_s0, 4  ;;  %s529_s13 = int_to_ptr.vmem [resolvable:$true] %s528_s13 }
  0xbf   :  { %v125_v28 = vadd.f32 %v124_v23, %v123_v17  ;;  %v140_v27 = vrot.slane %v139_v24, 2  ;;  %s579_s3 = scalar_lea.vmem %s529_s13, 128  ;;  %p584_p6 = scmp.lt.s32.totalorder %s529_s13, %s529_s13 }
  0xc0   :  { %v133_v56 = vrot.slane %v132_v51, 1  ;;  %v149_v29 = vrot.slane %v148_v25, 2  ;;  %p580_p5 = scmp.ne.s32.totalorder %s529_s13, %s579_s3  ;;  %p585_p7 = scmp.lt.s32.totalorder %s579_s3, %s579_s3 }
  0xc1   :  { %v141_v31 = vadd.f32 %v140_v27, %v139_v24  ;;  %v269_v57 = vsel %vm268_vm4, %v125_v28, %v267_v10 }
  0xc2   :  { %v134_v26 = vadd.f32 %v133_v56, %v132_v51  ;;  %v150_v62 = vadd.f32 %v149_v29, %v148_v25  ;;  %p586_p8 = por %p585_p7, %p584_p6 }
  0xc3   :  { %v142_v11 = vrot.slane %v141_v31, 1  ;;  %v374_v48 = vld [vmem:[#allocation4] sm:$0x1]  ;;  %v376_v58 = vld [vmem:[#allocation6] sm:$0x1] }
  0xc4   :  { %v151_v63 = vrot.slane %v150_v62, 1  ;;  %v271_v32 = vsel %vm270_vm5, %v134_v26, %v269_v57  ;;  %v375_v39 = vld [vmem:[#allocation5] sm:$0x1]  ;;  %v377_v36 = vld [vmem:[#allocation7] sm:$0x1]  ;;  %v379_v52 = vmul.f32 %v870_v9, %v374_v48  ;;  %p587_p9 = pnand %p586_p8, %p580_p5 }
  0xc5   :  { %v143_v34 = vadd.f32 %v142_v11, %v141_v31  ;;  %v383_v3 = vmul.f32 %v870_v9, %v375_v39 }
  0xc6   :  { %v152_v0 = vadd.f32 %v151_v63, %v150_v62 }
  0xc7   :  { %v273_v16 = vsel %vm272_vm6, %v143_v34, %v271_v32 }
  0xc8   :  { %v275_v33 = vsel %vm274_vm7, %v152_v0, %v273_v16 }
  0xc9   :  { %277 = vxpose.xlu0.b32.start.end [1/1] (short) (narrow) %v275_v33, 8 }
 0x137   :  { %v345_v35 = vpop.trf.xlu1 }
 0x138   :  { %v363_v1 = vadd.f32 %v362_v5, %v345_v35 }
 0x13a   :  { %364 = vst.msk [vmem:[#allocation3] sm:$0xff] %vm80_vm0, %v363_v1 }
 0x141   :  { %v384_v37 = vld [vmem:[#allocation3] sm:$0x1]  ;;  %v401_v43 = vld [vmem:[#allocation3 + $0x1] sm:$0x1]  ;;  %v417_v49 = vld [vmem:[#allocation3 + $0x2] sm:$0x1] }
 0x142   :  { %v385_v38 = vadd.f32 %v384_v37, %v383_v3  ;;  %v433_v61 = vld [vmem:[#allocation3 + $0x3] sm:$0x1]  ;;  %v449_v19 = vld [vmem:[#allocation3 + $0x4] sm:$0x1]  ;;  %v465_v27 = vld [vmem:[#allocation3 + $0x5] sm:$0x1] }
 0x143   :  { %v481_v34 = vld [vmem:[#allocation3 + $0x6] sm:$0x1]  ;;  %v497_v37 = vld [vmem:[#allocation3 + $0x7] sm:$0x1] }
 0x144   :  { %v386_v40 = vsub.f32 %v385_v38, %v377_v36 }
 0x146   :  { %vm390_vm9 = vcmp.gt.f32.partialorder %v386_v40, 1.0  ;;  %v400_v41 = vmul.f32 %v386_v40, %v870_v9 }
 0x147   :  { %v545_v42 = vsel %vm390_vm9, 1.0, %v631_v60 }
 0x148   :  { %395 = vst.msk [vmem:[#allocation13] sm:$0x1] %vm369_vm8, %v545_v42  ;;  %v402_v44 = vadd.f32 %v401_v43, %v400_v41 }
 0x149   :  { %v293_v6 = vpop.trf.xlu0 }
 0x14a   :  { %v311_v45 = vadd.f32 %v310_v30, %v293_v6  ;;  %v403_v46 = vsub.f32 %v402_v44, %v545_v42 }
 0x14c   :  { %312 = vst.msk [vmem:[#allocation2] sm:$0xff] %vm80_vm0, %v311_v45  ;;  %vm407_vm10 = vcmp.gt.f32.partialorder %v403_v46, 1.0  ;;  %v416_v47 = vmul.f32 %v403_v46, %v870_v9 }
 0x14d   :  { %v547_v54 = vsel %vm407_vm10, 1.0, %v631_v60 }
 0x14e   :  { %411 = vst.msk [vmem:[#allocation13 + $0x1] sm:$0x1] %vm369_vm8, %v547_v54  ;;  %v418_v50 = vadd.f32 %v417_v49, %v416_v47 }
 0x150   :  { %v419_v53 = vsub.f32 %v418_v50, %v547_v54 }
 0x152   :  { %vm423_vm11 = vcmp.gt.f32.partialorder %v419_v53, 1.0  ;;  %v432_v55 = vmul.f32 %v419_v53, %v870_v9 }
 0x153   :  { %v380_v59 = vld [vmem:[#allocation2] sm:$0x1]  ;;  %v549_v7 = vsel %vm423_vm11, 1.0, %v631_v60  ;;  %v397_v17 = vld [vmem:[#allocation2 + $0x1] sm:$0x1] }
 0x154   :  { %v381_v2 = vadd.f32 %v380_v59, %v379_v52  ;;  %v434_v4 = vadd.f32 %v433_v61, %v432_v55  ;;  %427 = vst.msk [vmem:[#allocation13 + $0x2] sm:$0x1] %vm369_vm8, %v549_v7  ;;  %v413_v10 = vld [vmem:[#allocation2 + $0x2] sm:$0x1]  ;;  %v429_v63 = vld [vmem:[#allocation2 + $0x3] sm:$0x1] }
 0x155   :  { %v445_v3 = vld [vmem:[#allocation2 + $0x4] sm:$0x1]  ;;  %v461_v44 = vld [vmem:[#allocation2 + $0x5] sm:$0x1] }
 0x156   :  { %v382_v8 = vsub.f32 %v381_v2, %v376_v58  ;;  %v435_v12 = vsub.f32 %v434_v4, %v549_v7 }
 0x158   :  { %vm387_vm12 = vcmp.gt.f32.partialorder %v382_v8, 1.0  ;;  %v396_v13 = vmul.f32 %v382_v8, %v870_v9  ;;  %vm439_vm13 = vcmp.gt.f32.partialorder %v435_v12, 1.0  ;;  %v448_v14 = vmul.f32 %v435_v12, %v870_v9 }
 0x159   :  { %v544_v15 = vsel %vm387_vm12, 1.0, %v631_v60  ;;  %v551_v18 = vsel %vm439_vm13, 1.0, %v631_v60 }
 0x15a   :  { %394 = vst.msk [vmem:[#allocation12] sm:$0x1] %vm369_vm8, %v544_v15  ;;  %v398_v20 = vadd.f32 %v397_v17, %v396_v13  ;;  %443 = vst.msk [vmem:[#allocation13 + $0x3] sm:$0x1] %vm369_vm8, %v551_v18  ;;  %v450_v21 = vadd.f32 %v449_v19, %v448_v14 }
 0x15c   :  { %v399_v22 = vsub.f32 %v398_v20, %v544_v15  ;;  %v451_v23 = vsub.f32 %v450_v21, %v551_v18 }
 0x15e   :  { %vm404_vm14 = vcmp.gt.f32.partialorder %v399_v22, 1.0  ;;  %v412_v24 = vmul.f32 %v399_v22, %v870_v9  ;;  %vm455_vm15 = vcmp.gt.f32.partialorder %v451_v23, 1.0  ;;  %v464_v51 = vmul.f32 %v451_v23, %v870_v9 }
 0x15f   :  { %v546_v25 = vsel %vm404_vm14, 1.0, %v631_v60  ;;  %v553_v28 = vsel %vm455_vm15, 1.0, %v631_v60 }
 0x160   :  { %410 = vst.msk [vmem:[#allocation12 + $0x1] sm:$0x1] %vm369_vm8, %v546_v25  ;;  %v414_v56 = vadd.f32 %v413_v10, %v412_v24  ;;  %459 = vst.msk [vmem:[#allocation13 + $0x4] sm:$0x1] %vm369_vm8, %v553_v28  ;;  %v466_v29 = vadd.f32 %v465_v27, %v464_v51 }
 0x162   :  { %v415_v31 = vsub.f32 %v414_v56, %v546_v25  ;;  %v467_v57 = vsub.f32 %v466_v29, %v553_v28 }
 0x164   :  { %vm420_vm0 = vcmp.gt.f32.partialorder %v415_v31, 1.0  ;;  %v428_v26 = vmul.f32 %v415_v31, %v870_v9  ;;  %vm471_vm1 = vcmp.gt.f32.partialorder %v467_v57, 1.0  ;;  %v480_v62 = vmul.f32 %v467_v57, %v870_v9 }
 0x165   :  { %v548_v11 = vsel %vm420_vm0, 1.0, %v631_v60  ;;  %v555_v32 = vsel %vm471_vm1, 1.0, %v631_v60 }
 0x166   :  { %426 = vst.msk [vmem:[#allocation12 + $0x2] sm:$0x1] %vm369_vm8, %v548_v11  ;;  %v430_v0 = vadd.f32 %v429_v63, %v428_v26  ;;  %475 = vst.msk [vmem:[#allocation13 + $0x5] sm:$0x1] %vm369_vm8, %v555_v32  ;;  %v482_v16 = vadd.f32 %v481_v34, %v480_v62 }
 0x168   :  { %v431_v33 = vsub.f32 %v430_v0, %v548_v11  ;;  %v483_v5 = vsub.f32 %v482_v16, %v555_v32 }
 0x16a   :  { %vm436_vm2 = vcmp.gt.f32.partialorder %v431_v33, 1.0  ;;  %v444_v35 = vmul.f32 %v431_v33, %v870_v9  ;;  %vm487_vm3 = vcmp.gt.f32.partialorder %v483_v5, 1.0  ;;  %v496_v1 = vmul.f32 %v483_v5, %v870_v9 }
 0x16b   :  { %v550_v39 = vsel %vm436_vm2, 1.0, %v631_v60  ;;  %v557_v36 = vsel %vm487_vm3, 1.0, %v631_v60 }
 0x16c   :  { %442 = vst.msk [vmem:[#allocation12 + $0x3] sm:$0x1] %vm369_vm8, %v550_v39  ;;  %v446_v38 = vadd.f32 %v445_v3, %v444_v35  ;;  %491 = vst.msk [vmem:[#allocation13 + $0x6] sm:$0x1] %vm369_vm8, %v557_v36  ;;  %v498_v40 = vadd.f32 %v497_v37, %v496_v1 }
 0x16e   :  { %v447_v41 = vsub.f32 %v446_v38, %v550_v39  ;;  %v499_v30 = vsub.f32 %v498_v40, %v557_v36 }
 0x170   :  { %vm452_vm4 = vcmp.gt.f32.partialorder %v447_v41, 1.0  ;;  %v460_v42 = vmul.f32 %v447_v41, %v870_v9  ;;  %vm503_vm5 = vcmp.gt.f32.partialorder %v499_v30, 1.0  ;;  %509 = vst.msk [vmem:[#allocation5] sm:$0x1] %vm369_vm8, %v499_v30 }
 0x171   :  { %v552_v43 = vsel %vm452_vm4, 1.0, %v631_v60  ;;  %v559_v6 = vsel %vm503_vm5, 1.0, %v631_v60 }
 0x172   :  { %458 = vst.msk [vmem:[#allocation12 + $0x4] sm:$0x1] %vm369_vm8, %v552_v43  ;;  %v462_v45 = vadd.f32 %v461_v44, %v460_v42  ;;  %507 = vst.msk [vmem:[#allocation13 + $0x7] sm:$0x1] %vm369_vm8, %v559_v6 }
 0x173   :  { %511 = vst.msk [vmem:[#allocation7] sm:$0x1] %vm369_vm8, %v559_v6 }
 0x174   :  { %590 = shalt.err (!%p587_p9)
}
 0x175   :  { %s591_s16 = scalar_lea.hbm %s954_s5, 128 }
 0x176   :  { %p592_p10 = scmp.ne.s32.totalorder %s954_s5, %s591_s16  ;;  %p595_p11 = scmp.lt.u32.totalorder %s591_s16, %s954_s5 }
 0x178   :  { %p597_p12 = pnand %p595_p11, %p592_p10 }
 0x17a   :  { %600 = shalt.err (!%p597_p12)
}
 0x17b   :  { %531 = dma.vmem_to_hbm [thread:$0]  %s529_s13, 128, %s954_s5, [#allocation14]   ;;  %v463_v46 = vsub.f32 %v462_v45, %v552_v43  ;;  %v477_v54 = vld [vmem:[#allocation2 + $0x6] sm:$0x1]  ;;  %v493_v55 = vld [vmem:[#allocation2 + $0x7] sm:$0x1] }
 0x17c   :  { %s633_s5 = smov [#allocation12]  }
 0x17d   :  { %vm468_vm6 = vcmp.gt.f32.partialorder %v463_v46, 1.0  ;;  %v476_v47 = vmul.f32 %v463_v46, %v870_v9  ;;  %s518_s23 = sshll.u32 %s633_s5, 4  ;;  %s519_s23 = int_to_ptr.vmem [resolvable:$true] %s518_s23 }
 0x17e   :  { %v554_v48 = vsel %vm468_vm6, 1.0, %v631_v60  ;;  %s601_s24 = scalar_lea.vmem %s519_s23, 128  ;;  %p606_p0 = scmp.lt.s32.totalorder %s519_s23, %s519_s23 }
 0x17f   :  { %474 = vst.msk [vmem:[#allocation12 + $0x5] sm:$0x1] %vm369_vm8, %v554_v48  ;;  %v478_v49 = vadd.f32 %v477_v54, %v476_v47  ;;  %p602_p13 = scmp.ne.s32.totalorder %s519_s23, %s601_s24  ;;  %p607_p1 = scmp.lt.s32.totalorder %s601_s24, %s601_s24 }
 0x181   :  { %v479_v50 = vsub.f32 %v478_v49, %v554_v48  ;;  %p608_p2 = por %p607_p1, %p606_p0 }
 0x183   :  { %vm484_vm7 = vcmp.gt.f32.partialorder %v479_v50, 1.0  ;;  %v492_v52 = vmul.f32 %v479_v50, %v870_v9  ;;  %p609_p3 = pnand %p608_p2, %p602_p13 }
 0x184   :  { %v556_v53 = vsel %vm484_vm7, 1.0, %v631_v60 }
 0x185   :  { %490 = vst.msk [vmem:[#allocation12 + $0x6] sm:$0x1] %vm369_vm8, %v556_v53  ;;  %v494_v58 = vadd.f32 %v493_v55, %v492_v52 }
 0x187   :  { %v495_v59 = vsub.f32 %v494_v58, %v556_v53 }
 0x189   :  { %vm500_vm9 = vcmp.gt.f32.partialorder %v495_v59, 1.0  ;;  %508 = vst.msk [vmem:[#allocation4] sm:$0x1] %vm369_vm8, %v495_v59 }
 0x18a   :  { %v558_v61 = vsel %vm500_vm9, 1.0, %v631_v60 }
 0x18b   :  { %506 = vst.msk [vmem:[#allocation12 + $0x7] sm:$0x1] %vm369_vm8, %v558_v61  ;;  %510 = vst.msk [vmem:[#allocation6] sm:$0x1] %vm369_vm8, %v558_v61 }
 0x18c   :  { %612 = shalt.err (!%p609_p3)
}
 0x18d   :  { %s613_s1 = scalar_lea.hbm %s953_s4, 128 }
 0x18e   :  { %p614_p4 = scmp.ne.s32.totalorder %s953_s4, %s613_s1  ;;  %p617_p5 = scmp.lt.u32.totalorder %s613_s1, %s953_s4 }
 0x190   :  { %p619_p6 = pnand %p617_p5, %p614_p4 }
 0x192   :  { %622 = shalt.err (!%p619_p6)
}
 0x193   :  { %521 = dma.vmem_to_hbm [thread:$0]  %s519_s23, 128, %s953_s4, [#allocation10]  }
 0x194   :  { %625 = dma.done.wait [#allocation10], 128  }
 0x195   :  { %626 = vsyncadd [#allocation10], 4294967168 }
 0x196   :  { %627 = dma.done.wait [#allocation14], 128  }
 0x197   :  { %628 = vsyncadd [#allocation14], 4294967168 }
 0x198   :  { %538 = vsyncpa [#allocation10], 1 }
 0x199   :  { %539 = vsyncpa [#allocation14], 1 }
 0x19a   :  { %540 = vsyncpa [#allocation11], 1 }

</bundles_post_ra>
